<compile_context>
chip_gen: v7x
topology: tpu7x:2x2x1
jax: 0.10.0
libtpu: 0.0.40
codegen_flags: <defaults>
</compile_context>

<pallas_src>
import functools

import jax
import jax.numpy as jnp
from jax.experimental import pallas as pl
from jax.experimental.pallas import tpu as pltpu

NUM_LABELS = 2
HIDDEN_DIM = 64
NUM_LAYERS = 2          # -> 3 Linear layers total: L->H, H->H, H->L
NUM_ITERATIONS = 5

_NEG_BIG = -1e30        # "minus infinity" for padded point columns (softmax mass 0)


def _crf_rnn_kernel(normals_ref, logits_ref, w_eff_ref, b_eff_ref, out_ref, *,
                    num_iterations):
    normals = normals_ref[...]          # (8, n)  rows 3..7 and padded cols are zero
    logits = logits_ref[...]            # (L, n)  padded cols are -1e30
    w_eff = w_eff_ref[...]              # (L, L)  collapsed compatibility MLP

    # Fold the collapsed bias into the residual logits once (prologue, not per-iter).
    logits_b = logits + b_eff_ref[...]  # (L, n); padded cols stay ~ -1e30

    cur = logits
    for _ in range(num_iterations):
        # Softmax over points (torch Softmax(dim=0) on the (n, L) layout) == softmax
        # over the lane axis here. Padded columns underflow to exactly 0.
        m = jnp.max(cur, axis=-1, keepdims=True)                 # (L, 1)  XLU
        e = jnp.exp(cur - m)                                     # (L, n)  EUP
        s = jnp.sum(e, axis=-1, keepdims=True)                   # (L, 1)  XLU
        q = e * (1.0 / s)                                        # exact reciprocal

        # (N^T N) q with the pairwise matrix fused away, and the collapsed MLP applied
        # to the tiny intermediate before re-expanding by normals:
        t = jax.lax.dot_general(q, normals, (((1,), (1,)), ((), ())),
                                preferred_element_type=jnp.float32)   # (L, 8) K=n
        u = jnp.dot(w_eff, t, preferred_element_type=jnp.float32)     # (L, 8) tiny
        cur = jnp.dot(u, normals, preferred_element_type=jnp.float32) + logits_b

    out_ref[...] = cur                                           # lane-dense store


def crf_rnn_forward(points, logits, normals, params,
                    num_iterations=NUM_ITERATIONS):
    """points: (3, n), logits: (n, num_labels), normals: (3, n) -> (n, num_labels)."""
    del points  # only used for `n` in the torch code; logits carries n here
    n, num_labels = logits.shape
    n_pad = max(128, ((n + 127) // 128) * 128)   # lane-multiple padding

    # Feature-major (features x points). Padded point columns: logits = -1e30 (zero
    # softmax mass), normals = 0 (zero message contribution). Normals' leading dim is
    # zero-padded 3 -> 8 sublanes; the extra rows contribute exactly 0.
    logits_fm = jnp.pad(logits.astype(jnp.float32).T,
                        ((0, 0), (0, n_pad - n)), constant_values=_NEG_BIG)
    normals_fm = jnp.pad(normals.astype(jnp.float32),
                         ((0, 8 - normals.shape[0]), (0, n_pad - n)))

    # Collapse the activation-free 3-layer compatibility MLP to one affine map.
    # Valid because there is NO nonlinearity between Linear_0/1/2 in the module.
    (w0, b0), (w1, b1), (w2, b2) = params
    w_eff = (w2 @ (w1 @ w0)).astype(jnp.float32)               # (L, L)
    b_eff = (w2 @ (w1 @ b0 + b1) + b2).astype(jnp.float32)     # (L,)

    kernel = functools.partial(_crf_rnn_kernel, num_iterations=num_iterations)
    vmem = pl.BlockSpec(memory_space=pltpu.MemorySpace.VMEM)

    # Per-generation VMEM budget with headroom (never ask for all of v7x's 64 MiB).
    try:
        vmem_cap = int(pltpu.get_tpu_info().vmem_capacity_bytes)
    except Exception:
        vmem_cap = 64 * 1024 * 1024                              # conservative (v7x)
    # Post-collapse working set: normals 32n + a handful of (L,n) f32 buffers.
    need = (8 + 8 * num_labels) * 4 * n_pad * 2 + (2 << 20)
    vmem_limit = int(max(16 << 20,
                         min(max(need, 32 << 20), vmem_cap - (16 << 20))))

    cost = pl.CostEstimate(
        flops=num_iterations * (4 * num_labels * 8 * n_pad + 2 * num_labels * num_labels * 8),
        transcendentals=num_iterations * num_labels * n_pad,
        bytes_accessed=4 * ((8 + 2 * num_labels) * n_pad
                            + num_labels * num_labels + num_labels),
    )

    out_fm = pl.pallas_call(
        kernel,
        out_shape=jax.ShapeDtypeStruct((num_labels, n_pad), jnp.float32),
        in_specs=[vmem] * 4,
        out_specs=vmem,
        compiler_params=pltpu.CompilerParams(vmem_limit_bytes=vmem_limit),
        cost_estimate=cost,
    )(normals_fm, logits_fm, w_eff, b_eff[:, None])

    return out_fm[:, :n].T      # back to the module's (n, num_labels) layout


def init_params(key, num_labels, hidden_dim, num_layers):
    """Deterministic nn.Linear-style init: U(-1/sqrt(fan_in), 1/sqrt(fan_in))."""
    dims = [num_labels] + [hidden_dim] * num_layers + [num_labels]
    params = []
    for i in range(len(dims) - 1):
        fan_in, fan_out = dims[i], dims[i + 1]
        key, kw, kb = jax.random.split(key, 3)
        bound = 1.0 / float(jnp.sqrt(jnp.float32(fan_in)))
        w = jax.random.uniform(kw, (fan_out, fan_in), jnp.float32, -bound, bound)
        b = jax.random.uniform(kb, (fan_out,), jnp.float32, -bound, bound)
        params.append((w, b))
    return params


def ref_forward(logits, normals, params, num_iterations):
    """Pure-JAX reference mirroring the PyTorch forward (materialized pairwise, uncollapsed MLP)."""
    pairwise = normals.T @ normals
    cur = logits
    for _ in range(num_iterations):
        q = jax.nn.softmax(cur, axis=0)
        msg = pairwise @ q
        for w, b in params:
            msg = msg @ w.T + b
        cur = msg + logits
    return cur


if __name__ == "__main__":
    key = jax.random.PRNGKey(0)
    kp, kl, kn, kparam = jax.random.split(key, 4)

    # Small random problem (n a lane multiple -> no padding path).
    n = 256
    points = jax.random.normal(kp, (3, n), jnp.float32)
    logits = jax.random.normal(kl, (n, NUM_LABELS), jnp.float32)
    normals = jax.random.normal(kn, (3, n), jnp.float32)
    params = init_params(kparam, NUM_LABELS, HIDDEN_DIM, NUM_LAYERS)

    out = jax.block_until_ready(crf_rnn_forward(points, logits, normals, params))
    ref = ref_forward(logits, normals, params, NUM_ITERATIONS)
    assert out.shape == (n, NUM_LABELS)
    assert jnp.allclose(out, ref, rtol=1e-4, atol=1e-4), "mismatch (n=256)"

    # The module's literal example tensors (n=3, exercises the lane-padding path).
    logits3 = jnp.array([[0.1, 0.2], [0.4, 0.5], [0.7, 0.8]], jnp.float32)
    normals3 = jnp.array([[0.5, 0.5, 0.0], [-0.5, 0.5, 0.0], [0.0, -0.5, 0.5]],
                         jnp.float32)
    points3 = jnp.array([[1.0, 2.0, 3.0], [4.0, 5.0, 6.0], [7.0, 8.0, 9.0]],
                        jnp.float32)
    out3 = jax.block_until_ready(crf_rnn_forward(points3, logits3, normals3, params))
    ref3 = ref_forward(logits3, normals3, params, NUM_ITERATIONS)
    assert out3.shape == (3, NUM_LABELS)
    assert jnp.allclose(out3, ref3, rtol=1e-4, atol=1e-4), "mismatch (module example)"

    print("KERNEL_OK")
</pallas_src>

<mosaic_0001>
module attributes {stable_mosaic.version = 11 : i64} {
  func.func @_crf_rnn_kernel(%arg0: memref<8x256xf32, #tpu.memory_space<vmem>>, %arg1: memref<2x256xf32, #tpu.memory_space<vmem>>, %arg2: memref<2x2xf32, #tpu.memory_space<vmem>>, %arg3: memref<2x1xf32, #tpu.memory_space<vmem>>, %arg4: memref<2x256xf32, #tpu.memory_space<vmem>>) attributes {dimension_semantics = [], scalar_prefetch = 0 : i64, scratch_operands = 0 : i64, tpu.core_type = #tpu.core_type<tc>} {
    %c0 = arith.constant 0 : index
    %c0_0 = arith.constant 0 : index
    %0 = vector.load %arg0[%c0, %c0_0] : memref<8x256xf32, #tpu.memory_space<vmem>>, vector<8x256xf32>
    %c0_1 = arith.constant 0 : index
    %c0_2 = arith.constant 0 : index
    %1 = vector.load %arg1[%c0_1, %c0_2] : memref<2x256xf32, #tpu.memory_space<vmem>>, vector<2x256xf32>
    %c0_3 = arith.constant 0 : index
    %c0_4 = arith.constant 0 : index
    %2 = vector.load %arg2[%c0_3, %c0_4] : memref<2x2xf32, #tpu.memory_space<vmem>>, vector<2x2xf32>
    %c0_5 = arith.constant 0 : index
    %c0_6 = arith.constant 0 : index
    %3 = vector.load %arg3[%c0_5, %c0_6] : memref<2x1xf32, #tpu.memory_space<vmem>>, vector<2x1xf32>
    %4 = vector.broadcast %3 : vector<2x1xf32> to vector<2x256xf32>
    %5 = arith.addf %1, %4 : vector<2x256xf32>
    %cst = arith.constant dense<0xFF800000> : vector<2xf32>
    %6 = vector.multi_reduction <maximumf>, %1, %cst [1] : vector<2x256xf32> to vector<2xf32>
    %7 = vector.shape_cast %6 : vector<2xf32> to vector<2x1xf32>
    %8 = vector.broadcast %7 : vector<2x1xf32> to vector<2x256xf32>
    %9 = arith.subf %1, %8 : vector<2x256xf32>
    %10 = math.exp %9 : vector<2x256xf32>
    %cst_7 = arith.constant dense<0.000000e+00> : vector<2xf32>
    %11 = vector.multi_reduction <add>, %10, %cst_7 [1] : vector<2x256xf32> to vector<2xf32>
    %12 = vector.shape_cast %11 : vector<2xf32> to vector<2x1xf32>
    %cst_8 = arith.constant 1.000000e+00 : f32
    %13 = vector.broadcast %cst_8 : f32 to vector<2x1xf32>
    %14 = arith.divf %13, %12 : vector<2x1xf32>
    %15 = vector.broadcast %14 : vector<2x1xf32> to vector<2x256xf32>
    %16 = arith.mulf %10, %15 : vector<2x256xf32>
    %cst_9 = arith.constant dense<0.000000e+00> : vector<2x8xf32>
    %17 = tpu.matmul %16, %0, %cst_9 {dimension_numbers = #tpu.dot_dimension_numbers<[1], [1], [0], [0], [0, 0, 1, 0], [], []>} : vector<2x256xf32>, vector<8x256xf32>, vector<2x8xf32> -> vector<2x8xf32>
    %cst_10 = arith.constant dense<0.000000e+00> : vector<2x8xf32>
    %18 = tpu.matmul %2, %17, %cst_10 {dimension_numbers = #tpu.dot_dimension_numbers<[1], [0], [0], [1], [0, 0, 1, 1], [], []>} : vector<2x2xf32>, vector<2x8xf32>, vector<2x8xf32> -> vector<2x8xf32>
    %cst_11 = arith.constant dense<0.000000e+00> : vector<2x256xf32>
    %19 = tpu.matmul %18, %0, %cst_11 {dimension_numbers = #tpu.dot_dimension_numbers<[1], [0], [0], [1], [0, 0, 1, 1], [], []>} : vector<2x8xf32>, vector<8x256xf32>, vector<2x256xf32> -> vector<2x256xf32>
    %20 = arith.addf %19, %5 : vector<2x256xf32>
    %cst_12 = arith.constant dense<0xFF800000> : vector<2xf32>
    %21 = vector.multi_reduction <maximumf>, %20, %cst_12 [1] : vector<2x256xf32> to vector<2xf32>
    %22 = vector.shape_cast %21 : vector<2xf32> to vector<2x1xf32>
    %23 = vector.broadcast %22 : vector<2x1xf32> to vector<2x256xf32>
    %24 = arith.subf %20, %23 : vector<2x256xf32>
    %25 = math.exp %24 : vector<2x256xf32>
    %cst_13 = arith.constant dense<0.000000e+00> : vector<2xf32>
    %26 = vector.multi_reduction <add>, %25, %cst_13 [1] : vector<2x256xf32> to vector<2xf32>
    %27 = vector.shape_cast %26 : vector<2xf32> to vector<2x1xf32>
    %cst_14 = arith.constant 1.000000e+00 : f32
    %28 = vector.broadcast %cst_14 : f32 to vector<2x1xf32>
    %29 = arith.divf %28, %27 : vector<2x1xf32>
    %30 = vector.broadcast %29 : vector<2x1xf32> to vector<2x256xf32>
    %31 = arith.mulf %25, %30 : vector<2x256xf32>
    %cst_15 = arith.constant dense<0.000000e+00> : vector<2x8xf32>
    %32 = tpu.matmul %31, %0, %cst_15 {dimension_numbers = #tpu.dot_dimension_numbers<[1], [1], [0], [0], [0, 0, 1, 0], [], []>} : vector<2x256xf32>, vector<8x256xf32>, vector<2x8xf32> -> vector<2x8xf32>
    %cst_16 = arith.constant dense<0.000000e+00> : vector<2x8xf32>
    %33 = tpu.matmul %2, %32, %cst_16 {dimension_numbers = #tpu.dot_dimension_numbers<[1], [0], [0], [1], [0, 0, 1, 1], [], []>} : vector<2x2xf32>, vector<2x8xf32>, vector<2x8xf32> -> vector<2x8xf32>
    %cst_17 = arith.constant dense<0.000000e+00> : vector<2x256xf32>
    %34 = tpu.matmul %33, %0, %cst_17 {dimension_numbers = #tpu.dot_dimension_numbers<[1], [0], [0], [1], [0, 0, 1, 1], [], []>} : vector<2x8xf32>, vector<8x256xf32>, vector<2x256xf32> -> vector<2x256xf32>
    %35 = arith.addf %34, %5 : vector<2x256xf32>
    %cst_18 = arith.constant dense<0xFF800000> : vector<2xf32>
    %36 = vector.multi_reduction <maximumf>, %35, %cst_18 [1] : vector<2x256xf32> to vector<2xf32>
    %37 = vector.shape_cast %36 : vector<2xf32> to vector<2x1xf32>
    %38 = vector.broadcast %37 : vector<2x1xf32> to vector<2x256xf32>
    %39 = arith.subf %35, %38 : vector<2x256xf32>
    %40 = math.exp %39 : vector<2x256xf32>
    %cst_19 = arith.constant dense<0.000000e+00> : vector<2xf32>
    %41 = vector.multi_reduction <add>, %40, %cst_19 [1] : vector<2x256xf32> to vector<2xf32>
    %42 = vector.shape_cast %41 : vector<2xf32> to vector<2x1xf32>
    %cst_20 = arith.constant 1.000000e+00 : f32
    %43 = vector.broadcast %cst_20 : f32 to vector<2x1xf32>
    %44 = arith.divf %43, %42 : vector<2x1xf32>
    %45 = vector.broadcast %44 : vector<2x1xf32> to vector<2x256xf32>
    %46 = arith.mulf %40, %45 : vector<2x256xf32>
    %cst_21 = arith.constant dense<0.000000e+00> : vector<2x8xf32>
    %47 = tpu.matmul %46, %0, %cst_21 {dimension_numbers = #tpu.dot_dimension_numbers<[1], [1], [0], [0], [0, 0, 1, 0], [], []>} : vector<2x256xf32>, vector<8x256xf32>, vector<2x8xf32> -> vector<2x8xf32>
    %cst_22 = arith.constant dense<0.000000e+00> : vector<2x8xf32>
    %48 = tpu.matmul %2, %47, %cst_22 {dimension_numbers = #tpu.dot_dimension_numbers<[1], [0], [0], [1], [0, 0, 1, 1], [], []>} : vector<2x2xf32>, vector<2x8xf32>, vector<2x8xf32> -> vector<2x8xf32>
    %cst_23 = arith.constant dense<0.000000e+00> : vector<2x256xf32>
    %49 = tpu.matmul %48, %0, %cst_23 {dimension_numbers = #tpu.dot_dimension_numbers<[1], [0], [0], [1], [0, 0, 1, 1], [], []>} : vector<2x8xf32>, vector<8x256xf32>, vector<2x256xf32> -> vector<2x256xf32>
    %50 = arith.addf %49, %5 : vector<2x256xf32>
    %cst_24 = arith.constant dense<0xFF800000> : vector<2xf32>
    %51 = vector.multi_reduction <maximumf>, %50, %cst_24 [1] : vector<2x256xf32> to vector<2xf32>
    %52 = vector.shape_cast %51 : vector<2xf32> to vector<2x1xf32>
    %53 = vector.broadcast %52 : vector<2x1xf32> to vector<2x256xf32>
    %54 = arith.subf %50, %53 : vector<2x256xf32>
    %55 = math.exp %54 : vector<2x256xf32>
    %cst_25 = arith.constant dense<0.000000e+00> : vector<2xf32>
    %56 = vector.multi_reduction <add>, %55, %cst_25 [1] : vector<2x256xf32> to vector<2xf32>
    %57 = vector.shape_cast %56 : vector<2xf32> to vector<2x1xf32>
    %cst_26 = arith.constant 1.000000e+00 : f32
    %58 = vector.broadcast %cst_26 : f32 to vector<2x1xf32>
    %59 = arith.divf %58, %57 : vector<2x1xf32>
    %60 = vector.broadcast %59 : vector<2x1xf32> to vector<2x256xf32>
    %61 = arith.mulf %55, %60 : vector<2x256xf32>
    %cst_27 = arith.constant dense<0.000000e+00> : vector<2x8xf32>
    %62 = tpu.matmul %61, %0, %cst_27 {dimension_numbers = #tpu.dot_dimension_numbers<[1], [1], [0], [0], [0, 0, 1, 0], [], []>} : vector<2x256xf32>, vector<8x256xf32>, vector<2x8xf32> -> vector<2x8xf32>
    %cst_28 = arith.constant dense<0.000000e+00> : vector<2x8xf32>
    %63 = tpu.matmul %2, %62, %cst_28 {dimension_numbers = #tpu.dot_dimension_numbers<[1], [0], [0], [1], [0, 0, 1, 1], [], []>} : vector<2x2xf32>, vector<2x8xf32>, vector<2x8xf32> -> vector<2x8xf32>
    %cst_29 = arith.constant dense<0.000000e+00> : vector<2x256xf32>
    %64 = tpu.matmul %63, %0, %cst_29 {dimension_numbers = #tpu.dot_dimension_numbers<[1], [0], [0], [1], [0, 0, 1, 1], [], []>} : vector<2x8xf32>, vector<8x256xf32>, vector<2x256xf32> -> vector<2x256xf32>
    %65 = arith.addf %64, %5 : vector<2x256xf32>
    %cst_30 = arith.constant dense<0xFF800000> : vector<2xf32>
    %66 = vector.multi_reduction <maximumf>, %65, %cst_30 [1] : vector<2x256xf32> to vector<2xf32>
    %67 = vector.shape_cast %66 : vector<2xf32> to vector<2x1xf32>
    %68 = vector.broadcast %67 : vector<2x1xf32> to vector<2x256xf32>
    %69 = arith.subf %65, %68 : vector<2x256xf32>
    %70 = math.exp %69 : vector<2x256xf32>
    %cst_31 = arith.constant dense<0.000000e+00> : vector<2xf32>
    %71 = vector.multi_reduction <add>, %70, %cst_31 [1] : vector<2x256xf32> to vector<2xf32>
    %72 = vector.shape_cast %71 : vector<2xf32> to vector<2x1xf32>
    %cst_32 = arith.constant 1.000000e+00 : f32
    %73 = vector.broadcast %cst_32 : f32 to vector<2x1xf32>
    %74 = arith.divf %73, %72 : vector<2x1xf32>
    %75 = vector.broadcast %74 : vector<2x1xf32> to vector<2x256xf32>
    %76 = arith.mulf %70, %75 : vector<2x256xf32>
    %cst_33 = arith.constant dense<0.000000e+00> : vector<2x8xf32>
    %77 = tpu.matmul %76, %0, %cst_33 {dimension_numbers = #tpu.dot_dimension_numbers<[1], [1], [0], [0], [0, 0, 1, 0], [], []>} : vector<2x256xf32>, vector<8x256xf32>, vector<2x8xf32> -> vector<2x8xf32>
    %cst_34 = arith.constant dense<0.000000e+00> : vector<2x8xf32>
    %78 = tpu.matmul %2, %77, %cst_34 {dimension_numbers = #tpu.dot_dimension_numbers<[1], [0], [0], [1], [0, 0, 1, 1], [], []>} : vector<2x2xf32>, vector<2x8xf32>, vector<2x8xf32> -> vector<2x8xf32>
    %cst_35 = arith.constant dense<0.000000e+00> : vector<2x256xf32>
    %79 = tpu.matmul %78, %0, %cst_35 {dimension_numbers = #tpu.dot_dimension_numbers<[1], [0], [0], [1], [0, 0, 1, 1], [], []>} : vector<2x8xf32>, vector<8x256xf32>, vector<2x256xf32> -> vector<2x256xf32>
    %80 = arith.addf %79, %5 : vector<2x256xf32>
    %c0_36 = arith.constant 0 : index
    %c0_37 = arith.constant 0 : index
    %81 = vector.load %arg4[%c0_36, %c0_37] : memref<2x256xf32, #tpu.memory_space<vmem>>, vector<2x256xf32>
    tpu.vector_store %arg4[%c0_36, %c0_37], %80 {strides = array<i32>} : memref<2x256xf32, #tpu.memory_space<vmem>>, vector<2x256xf32>,
    return
  }
}

</mosaic_0001>

<bundles_post_ra>
// kernel: tpu_custom_call.1
= control target key start
LH: loop header
LB: loop body
LE: loop exit
PB: predicated region body
PF: predicated region fallthrough
CT: control target
= control target key end

     0   :  { %9 = vsyncpa [#allocation3], 0  ;;  %s1638_s0 = inlined_call_operand.hbm [shape: f32[8,256], index: 0, kind: input, shape index: {}]   ;;  %s1639_s1 = inlined_call_operand.vmem [shape: f32[2,256], index: 1, kind: input, shape index: {}]   ;;  %s1640_s2 = inlined_call_operand.vmem [shape: f32[2,2], index: 2, kind: input, shape index: {}]   ;;  %s1641_s3 = inlined_call_operand.vmem [shape: f32[2,1], index: 3, kind: input, shape index: {}]   ;;  %s1642_s4 = inlined_call_operand.hbm [shape: f32[2,256], index: 4, kind: output, shape index: {}]  }
   0x1   :  { %10 = vsyncpa [#allocation4], 0  ;;  %s1460_s15 = smov [#allocation2]   ;;  %s1412_s19 = scalar_lea.hbm %s1638_s0, 256 }
   0x2   :  { %s17_s16 = sshll.u32 %s1460_s15, 4  ;;  %p1413_p0 = scmp.ne.s32.totalorder %s1638_s0, %s1412_s19  ;;  %s18_s16 = int_to_ptr.vmem [resolvable:$true] %s17_s16 }
   0x3   :  { %p1416_p1 = scmp.lt.u32.totalorder %s1412_s19, %s1638_s0 }
   0x5   :  { %p1418_p2 = pnand %p1416_p1, %p1413_p0 }
   0x7   :  { %1421 = shalt.err (!%p1418_p2)
}
   0x8   :  { %s1422_s24 = scalar_lea.vmem %s18_s16, 256  ;;  %p1427_p4 = scmp.lt.s32.totalorder %s18_s16, %s18_s16 }
   0x9   :  { %p1423_p3 = scmp.ne.s32.totalorder %s18_s16, %s1422_s24  ;;  %p1428_p5 = scmp.lt.s32.totalorder %s1422_s24, %s1422_s24 }
   0xb   :  { %p1429_p6 = por %p1428_p5, %p1427_p4 }
   0xd   :  { %p1430_p7 = pnand %p1429_p6, %p1423_p3 }
   0xf   :  { %1433 = shalt.err (!%p1430_p7)
}
  0x10   :  { %20 = dma.hbm_to_vmem [thread:$0]  %s1638_s0, 256, %s18_s16, [#allocation3]  }
  0x11   :  { %1456 = dma.done.wait [#allocation3], 256  }
  0x12   :  { %1457 = vsyncadd [#allocation3], 4294967040  ;;  %v42_v0 = vlaneseq  ;;  %v1461_v1 = vmov 1983009808   ;;  %v1509_v6 = vld [vmem:[%s1639_s1] sm:$0xf] }
  0x13   :  { %v50_v2 = vunpack.c.l.s4 %v1461_v1  ;;  %vm59_vm0 = vcmask 1041408   ;;  %v1462_v12 = vmov 269488144   ;;  %v1519_v26 = vld [vmem:[#allocation2 + $0x8] sm:$0xff]  ;;  %v1521_v27 = vld [vmem:[#allocation2] sm:$0xff]  ;;  %v1463_v34 = vmov 0.0  }
  0x14   :  { %v43_v3 = vshrl.u32 %v42_v0, 7  ;;  %v40_v13 = vunpack.c.l.s4 %v1462_v12  ;;  %116 = vmatprep.subr.mxu0 %v1519_v26  ;;  %1350 = vmatprep.subr.mxu1 %v1463_v34  ;;  %vm1464_vm1 = vmmov 0   ;;  %v1535_v35 = vld [vmem:[%s1640_s2] sm:$0x3]  ;;  %vm186_vm2 = vcmask 15360   ;;  %s1466_s2 = smov [#allocation5]  }
  0x15   :  { %v51_v4 = vunpack.c.0.s8 %v50_v2  ;;  %117 = vmatpush1.xpose.msra.mxu0 %v1521_v27  ;;  %1352 = vmatprep.mubr.msk.f32.mxu1 %vm1464_vm1, %v1463_v34  ;;  %v34_v38 = vld [vmem:[%s1641_s3] sm:$0x3]  ;;  %v1465_v39 = vmov 0   ;;  %vm274_vm3 = vcmask 64512   ;;  %s1315_s3 = sshll.u32 %s1466_s2, 4  ;;  %s1316_s3 = int_to_ptr.vmem [resolvable:$true] %s1315_s3 }
  0x16   :  { %v41_v14 = vunpack.c.0.s8 %v40_v13  ;;  %369 = vmatprep.subr.mxu0 %v1519_v26  ;;  %1382 = vset.pattern.permute.xlu1 %v1465_v39  ;;  %s1434_s5 = scalar_lea.vmem %s1316_s3, 64  ;;  %p1439_p9 = scmp.lt.s32.totalorder %s1316_s3, %s1316_s3 }
  0x17   :  { %v1504_v5 = vsub.s32 %v51_v4, %v43_v3  ;;  %1383 = vset.pattern.permute.xlu0 %v1465_v39  ;;  %37 = vperm.xlu1 %1382, %v34_v38   ;;  %p1435_p8 = scmp.ne.s32.totalorder %s1316_s3, %s1434_s5  ;;  %p1440_p10 = scmp.lt.s32.totalorder %s1434_s5, %s1434_s5 }
  0x18   :  { %v44_v15 = vsub.s32 %v41_v14, %v43_v3 }
  0x19   :  { %v55_v7 = vrot.slane %v1509_v6, %v1504_v5  ;;  %p1441_p11 = por %p1440_p10, %p1439_p9 }
  0x1b   :  { %v56_v8 = vcombine.high %v55_v7, %v55_v7  ;;  %v60_v9 = vsel %vm59_vm0, %v55_v7, -inf  ;;  %p1442_p12 = pnand %p1441_p11, %p1435_p8 }
  0x1d   :  { %v61_v10 = vsel %vm59_vm0, %v56_v8, -inf }
  0x1e   :  { %v62_v11 = vmax.f32 %v60_v9, %v61_v10 }
  0x20   :  { %63 = vmax.xlane.f32.xlu0 %v62_v11 }
  0x96   :  { %v38_v42 = vpop.permute.xlu1 %37 }
  0x97   :  { %v45_v43 = vrot.slane %v38_v42, %v44_v15 }
  0x99   :  { %v47_v44 = vadd.f32 %v45_v43, %v1509_v6 }
  0x9b   :  { %v1552_v45 = vrot.slane %v47_v44, %v1504_v5 }
  0x9d   :  { %v1556_v46 = vcombine.high %v1552_v45, %v1552_v45 }
  0xad   :  { %v64_v16 = vpop.xlane.xlu0 %63 }
  0xae   :  { %v72_v17 = vrot.slane %v64_v16, %v44_v15 }
  0xb0   :  { %v74_v18 = vsub.f32 %v1509_v6, %v72_v17 }
  0xb2   :  { %v75_v19 = vmul.f32 1.442695, %v74_v18 }
  0xb4   :  { %1384 = vpow2.f32 %v75_v19 }
  0xbe   :  { %v1385_v20 = vpop.eup %1384 }
  0xbf   :  { %v84_v21 = vrot.slane %v1385_v20, %v1504_v5 }
  0xc1   :  { %v85_v22 = vcombine.high %v84_v21, %v84_v21  ;;  %v88_v23 = vsel %vm59_vm0, %v84_v21, 0.0 }
  0xc3   :  { %v89_v24 = vsel %vm59_vm0, %v85_v22, 0.0 }
  0xc4   :  { %v90_v25 = vadd.f32 %v89_v24, %v88_v23 }
  0xc6   :  { %91 = vadd.xlane.f32.xlu0 %v90_v25 }
 0x153   :  { %v92_v28 = vpop.xlane.xlu0 %91 }
 0x154   :  { %1386 = vrcp.f32 %v92_v28 }
 0x15e   :  { %v1387_v29 = vpop.eup %1386 }
 0x15f   :  { %v102_v30 = vrot.slane %v1387_v29, %v44_v15 }
 0x161   :  { %v104_v31 = vmul.f32 %v1385_v20, %v102_v30 }
 0x163   :  { %v112_v32 = vrot.slane %v104_v31, %v1504_v5 }
 0x165   :  { %v113_v33 = vcombine.high %v112_v32, %v112_v32 }
 0x167   :  { %180 = vmatprep.mubr.f32.mxu0 %v113_v33 }
 0x168   :  { %181 = vmatmul.mubr.f32.vlgmr.msra.gmra.mrb[0].mxu0 %v112_v32 }
 0x169   :  { %370 = vmatpush1.xpose.msra.mxu0 %v1521_v27 }
 0x16a   :  { %515 = vmatprep.subr.mxu0 %v1519_v26 }
 0x23b   :  { %v182_v36 = vpop.f32.mrb[0].mxu0 }
 0x23c   :  { %v184_v37 = vpop.f32.mrb[1].mxu0  ;;  %1351 = vmatpush3.msk.msra.mxu1 %vm59_vm0, %v182_v36 }
 0x23d   :  { %1353 = vmatmul.mubr.msk.f32.vlgmr.msra.gmra.mrb[0].mxu1 %vm186_vm2, %v1535_v35  ;;  %278 = vmatprep.subr.mxu1 %v1519_v26 }
 0x23e   :  { %279 = vmatpush1.msra.mxu1 %v1521_v27  ;;  %342 = vmatprep.mubr.f32.mxu1 %v1463_v34 }
 0x23f   :  { %1355 = vmatprep.subr.mxu1 %v1463_v34 }
 0x310   :  { %v259_v40 = vpop.f32.mrb[0].mxu1 }
 0x311   :  { %v1354_v41 = vpop.f32.mrb[1].mxu1  ;;  %1326 = vmatmul.mubr.msk.f32.vlgmr.msra.gmra.mrb[2].mxu1 %vm274_vm3, %v259_v40 }
 0x312   :  { %1357 = vmatprep.mubr.msk.f32.mxu1 %vm1464_vm1, %v1463_v34 }
 0x3e4   :  { %v344_v47 = vpop.f32.mrb[2].mxu1 }
 0x3e5   :  { %v345_v48 = vadd.f32 %v344_v47, %v1552_v45  ;;  %v346_v49 = vpop.f32.mrb[3].mxu1 }
 0x3e6   :  { %v347_v50 = vadd.f32 %v346_v49, %v1556_v46 }
 0x3e7   :  { %v349_v51 = vsel %vm59_vm0, %v345_v48, -inf }
 0x3e8   :  { %v350_v52 = vsel %vm59_vm0, %v347_v50, -inf }
 0x3e9   :  { %v351_v53 = vmax.f32 %v349_v51, %v350_v52 }
 0x3eb   :  { %352 = vmax.xlane.f32.xlu1 %v351_v53 }
 0x478   :  { %v353_v54 = vpop.xlane.xlu1 %352 }
 0x479   :  { %v354_v55 = vsub.f32 %v345_v48, %v353_v54  ;;  %v355_v56 = vsub.f32 %v347_v50, %v353_v54 }
 0x47b   :  { %v356_v57 = vmul.f32 1.442695, %v354_v55  ;;  %v358_v58 = vmul.f32 1.442695, %v355_v56 }
 0x47d   :  { %1388 = vpow2.f32 %v356_v57 }
 0x47e   :  { %1390 = vpow2.f32 %v358_v58 }
 0x487   :  { %v1389_v59 = vpop.eup %1388 }
 0x488   :  { %v1391_v60 = vpop.eup %1390  ;;  %v360_v61 = vsel %vm59_vm0, %v1389_v59, 0.0 }
 0x489   :  { %v361_v62 = vsel %vm59_vm0, %v1391_v60, 0.0 }
 0x48a   :  { %v362_v63 = vadd.f32 %v361_v62, %v360_v61 }
 0x48c   :  { %363 = vadd.xlane.f32.xlu0 %v362_v63 }
 0x519   :  { %v364_v0 = vpop.xlane.xlu0 %363 }
 0x51a   :  { %1392 = vrcp.f32 %v364_v0 }
 0x524   :  { %v1393_v1 = vpop.eup %1392 }
 0x525   :  { %v368_v2 = vmul.f32 %v1393_v1, %v1391_v60  ;;  %v367_v3 = vmul.f32 %v1393_v1, %v1389_v59 }
 0x527   :  { %433 = vmatprep.mubr.f32.mxu0 %v368_v2 }
 0x528   :  { %434 = vmatmul.mubr.f32.vlgmr.msra.gmra.mrb[2].mxu0 %v367_v3 }
 0x529   :  { %516 = vmatpush1.msra.mxu0 %v1521_v27  ;;  %579 = vmatprep.mubr.f32.mxu0 %v1463_v34 }
 0x52a   :  { %1360 = vmatprep.subr.mxu0 %v1463_v34 }
 0x5fb   :  { %v435_v4 = vpop.f32.mrb[2].mxu0 }
 0x5fc   :  { %v437_v5 = vpop.f32.mrb[3].mxu0  ;;  %1356 = vmatpush3.msk.msra.mxu1 %vm59_vm0, %v435_v4 }
 0x5fd   :  { %1358 = vmatmul.mubr.msk.f32.vlgmr.msra.gmra.mrb[4].mxu1 %vm186_vm2, %v1535_v35  ;;  %606 = vmatprep.subr.mxu1 %v1519_v26 }
 0x603   :  { %607 = vmatpush1.xpose.msra.mxu1 %v1521_v27 }
 0x604   :  { %752 = vmatprep.subr.mxu1 %v1519_v26 }
 0x6d0   :  { %v508_v6 = vpop.f32.mrb[4].mxu1 }
 0x6d1   :  { %v1359_v7 = vpop.f32.mrb[5].mxu1  ;;  %1329 = vmatmul.mubr.msk.f32.vlgmr.msra.gmra.mrb[4].mxu0 %vm274_vm3, %v508_v6 }
 0x6d2   :  { %1362 = vmatprep.mubr.msk.f32.mxu0 %vm1464_vm1, %v1463_v34 }
 0x7a4   :  { %v581_v8 = vpop.f32.mrb[4].mxu0 }
 0x7a5   :  { %v582_v9 = vadd.f32 %v581_v8, %v1552_v45  ;;  %v583_v10 = vpop.f32.mrb[5].mxu0 }
 0x7a6   :  { %v584_v11 = vadd.f32 %v583_v10, %v1556_v46 }
 0x7a7   :  { %v586_v12 = vsel %vm59_vm0, %v582_v9, -inf }
 0x7a8   :  { %v587_v13 = vsel %vm59_vm0, %v584_v11, -inf }
 0x7a9   :  { %v588_v14 = vmax.f32 %v586_v12, %v587_v13 }
 0x7ab   :  { %589 = vmax.xlane.f32.xlu0 %v588_v14 }
 0x838   :  { %v590_v15 = vpop.xlane.xlu0 %589 }
 0x839   :  { %v591_v16 = vsub.f32 %v582_v9, %v590_v15  ;;  %v592_v17 = vsub.f32 %v584_v11, %v590_v15 }
 0x83b   :  { %v593_v18 = vmul.f32 1.442695, %v591_v16  ;;  %v595_v19 = vmul.f32 1.442695, %v592_v17 }
 0x83d   :  { %1394 = vpow2.f32 %v593_v18 }
 0x83e   :  { %1396 = vpow2.f32 %v595_v19 }
 0x847   :  { %v1395_v20 = vpop.eup %1394 }
 0x848   :  { %v1397_v21 = vpop.eup %1396  ;;  %v597_v22 = vsel %vm59_vm0, %v1395_v20, 0.0 }
 0x849   :  { %v598_v23 = vsel %vm59_vm0, %v1397_v21, 0.0 }
 0x84a   :  { %v599_v24 = vadd.f32 %v598_v23, %v597_v22 }
 0x84c   :  { %600 = vadd.xlane.f32.xlu0 %v599_v24 }
 0x8d9   :  { %v601_v25 = vpop.xlane.xlu0 %600 }
 0x8da   :  { %1398 = vrcp.f32 %v601_v25 }
 0x8e4   :  { %v1399_v28 = vpop.eup %1398 }
 0x8e5   :  { %v605_v29 = vmul.f32 %v1399_v28, %v1397_v21  ;;  %v604_v30 = vmul.f32 %v1399_v28, %v1395_v20 }
 0x8e7   :  { %670 = vmatprep.mubr.f32.mxu1 %v605_v29 }
 0x8e8   :  { %671 = vmatmul.mubr.f32.vlgmr.msra.gmra.mrb[6].mxu1 %v604_v30 }
 0x8e9   :  { %753 = vmatpush1.msra.mxu1 %v1521_v27  ;;  %816 = vmatprep.mubr.f32.mxu1 %v1463_v34 }
 0x8ea   :  { %1365 = vmatprep.subr.mxu1 %v1463_v34 }
 0x9bb   :  { %v672_v31 = vpop.f32.mrb[6].mxu1 }
 0x9bc   :  { %v674_v32 = vpop.f32.mrb[7].mxu1  ;;  %1361 = vmatpush3.msk.msra.mxu0 %vm59_vm0, %v672_v31 }
 0x9bd   :  { %1363 = vmatmul.mubr.msk.f32.vlgmr.msra.gmra.mrb[6].mxu0 %vm186_vm2, %v1535_v35  ;;  %843 = vmatprep.subr.mxu0 %v1519_v26 }
 0x9c3   :  { %844 = vmatpush1.xpose.msra.mxu0 %v1521_v27 }
 0x9c4   :  { %989 = vmatprep.subr.mxu0 %v1519_v26 }
 0xa90   :  { %v745_v33 = vpop.f32.mrb[6].mxu0 }
 0xa91   :  { %v1364_v36 = vpop.f32.mrb[7].mxu0  ;;  %1332 = vmatmul.mubr.msk.f32.vlgmr.msra.gmra.mrb[8].mxu1 %vm274_vm3, %v745_v33 }
 0xa92   :  { %1367 = vmatprep.mubr.msk.f32.mxu1 %vm1464_vm1, %v1463_v34 }
 0xb64   :  { %v818_v37 = vpop.f32.mrb[8].mxu1 }
 0xb65   :  { %v819_v38 = vadd.f32 %v818_v37, %v1552_v45  ;;  %v820_v39 = vpop.f32.mrb[9].mxu1 }
 0xb66   :  { %v821_v40 = vadd.f32 %v820_v39, %v1556_v46 }
 0xb67   :  { %v823_v41 = vsel %vm59_vm0, %v819_v38, -inf }
 0xb68   :  { %v824_v42 = vsel %vm59_vm0, %v821_v40, -inf }
 0xb69   :  { %v825_v43 = vmax.f32 %v823_v41, %v824_v42 }
 0xb6b   :  { %826 = vmax.xlane.f32.xlu0 %v825_v43 }
 0xbf8   :  { %v827_v44 = vpop.xlane.xlu0 %826 }
 0xbf9   :  { %v828_v47 = vsub.f32 %v819_v38, %v827_v44  ;;  %v829_v48 = vsub.f32 %v821_v40, %v827_v44 }
 0xbfb   :  { %v830_v49 = vmul.f32 1.442695, %v828_v47  ;;  %v832_v50 = vmul.f32 1.442695, %v829_v48 }
 0xbfd   :  { %1400 = vpow2.f32 %v830_v49 }
 0xbfe   :  { %1402 = vpow2.f32 %v832_v50 }
 0xc07   :  { %v1401_v51 = vpop.eup %1400 }
 0xc08   :  { %v1403_v52 = vpop.eup %1402  ;;  %v834_v53 = vsel %vm59_vm0, %v1401_v51, 0.0 }
 0xc09   :  { %v835_v54 = vsel %vm59_vm0, %v1403_v52, 0.0 }
 0xc0a   :  { %v836_v55 = vadd.f32 %v835_v54, %v834_v53 }
 0xc0c   :  { %837 = vadd.xlane.f32.xlu0 %v836_v55 }
 0xc99   :  { %v838_v56 = vpop.xlane.xlu0 %837 }
 0xc9a   :  { %1404 = vrcp.f32 %v838_v56 }
 0xca4   :  { %v1405_v57 = vpop.eup %1404 }
 0xca5   :  { %v842_v58 = vmul.f32 %v1405_v57, %v1403_v52  ;;  %v841_v59 = vmul.f32 %v1405_v57, %v1401_v51 }
 0xca7   :  { %907 = vmatprep.mubr.f32.mxu0 %v842_v58 }
 0xca8   :  { %908 = vmatmul.mubr.f32.vlgmr.msra.gmra.mrb[8].mxu0 %v841_v59 }
 0xca9   :  { %990 = vmatpush1.msra.mxu0 %v1521_v27  ;;  %1053 = vmatprep.mubr.f32.mxu0 %v1463_v34 }
 0xcaa   :  { %1370 = vmatprep.subr.mxu0 %v1463_v34 }
 0xd7b   :  { %v909_v60 = vpop.f32.mrb[8].mxu0 }
 0xd7c   :  { %v911_v61 = vpop.f32.mrb[9].mxu0  ;;  %1366 = vmatpush3.msk.msra.mxu1 %vm59_vm0, %v909_v60 }
 0xd7d   :  { %1368 = vmatmul.mubr.msk.f32.vlgmr.msra.gmra.mrb[10].mxu1 %vm186_vm2, %v1535_v35  ;;  %1080 = vmatprep.subr.mxu1 %v1519_v26 }
 0xd83   :  { %1081 = vmatpush1.xpose.msra.mxu1 %v1521_v27 }
 0xd84   :  { %1226 = vmatprep.subr.mxu1 %v1519_v26 }
 0xe50   :  { %v982_v62 = vpop.f32.mrb[10].mxu1 }
 0xe51   :  { %v1369_v63 = vpop.f32.mrb[11].mxu1  ;;  %1335 = vmatmul.mubr.msk.f32.vlgmr.msra.gmra.mrb[10].mxu0 %vm274_vm3, %v982_v62 }
 0xe52   :  { %1372 = vmatprep.mubr.msk.f32.mxu0 %vm1464_vm1, %v1463_v34 }
 0xf24   :  { %v1055_v0 = vpop.f32.mrb[10].mxu0 }
 0xf25   :  { %v1056_v1 = vadd.f32 %v1055_v0, %v1552_v45  ;;  %v1057_v2 = vpop.f32.mrb[11].mxu0 }
 0xf26   :  { %v1058_v3 = vadd.f32 %v1057_v2, %v1556_v46 }
 0xf27   :  { %v1060_v4 = vsel %vm59_vm0, %v1056_v1, -inf }
 0xf28   :  { %v1061_v5 = vsel %vm59_vm0, %v1058_v3, -inf }
 0xf29   :  { %v1062_v6 = vmax.f32 %v1060_v4, %v1061_v5 }
 0xf2b   :  { %1063 = vmax.xlane.f32.xlu0 %v1062_v6 }
 0xfb8   :  { %v1064_v26 = vpop.xlane.xlu0 %1063 }
 0xfb9   :  { %v1065_v7 = vsub.f32 %v1056_v1, %v1064_v26  ;;  %v1066_v8 = vsub.f32 %v1058_v3, %v1064_v26 }
 0xfbb   :  { %v1067_v9 = vmul.f32 1.442695, %v1065_v7  ;;  %v1069_v10 = vmul.f32 1.442695, %v1066_v8 }
 0xfbd   :  { %1406 = vpow2.f32 %v1067_v9 }
 0xfbe   :  { %1408 = vpow2.f32 %v1069_v10 }
 0xfc7   :  { %v1407_v11 = vpop.eup %1406 }
 0xfc8   :  { %v1409_v12 = vpop.eup %1408  ;;  %v1071_v13 = vsel %vm59_vm0, %v1407_v11, 0.0 }
 0xfc9   :  { %v1072_v14 = vsel %vm59_vm0, %v1409_v12, 0.0 }
 0xfca   :  { %v1073_v15 = vadd.f32 %v1072_v14, %v1071_v13 }
 0xfcc   :  { %1074 = vadd.xlane.f32.xlu0 %v1073_v15 }
0x1059   :  { %v1075_v16 = vpop.xlane.xlu0 %1074 }
0x105a   :  { %1410 = vrcp.f32 %v1075_v16 }
0x1064   :  { %v1411_v17 = vpop.eup %1410 }
0x1065   :  { %v1079_v18 = vmul.f32 %v1411_v17, %v1409_v12  ;;  %v1078_v19 = vmul.f32 %v1411_v17, %v1407_v11 }
0x1067   :  { %1144 = vmatprep.mubr.f32.mxu1 %v1079_v18 }
0x1068   :  { %1145 = vmatmul.mubr.f32.vlgmr.msra.gmra.mrb[12].mxu1 %v1078_v19 }
0x1069   :  { %1227 = vmatpush1.msra.mxu1 %v1521_v27  ;;  %1290 = vmatprep.mubr.f32.mxu1 %v1463_v34 }
0x113b   :  { %v1146_v20 = vpop.f32.mrb[12].mxu1 }
0x113c   :  { %v1148_v21 = vpop.f32.mrb[13].mxu1  ;;  %1371 = vmatpush3.msk.msra.mxu0 %vm59_vm0, %v1146_v20 }
0x113d   :  { %1373 = vmatmul.mubr.msk.f32.vlgmr.msra.gmra.mrb[12].mxu0 %vm186_vm2, %v1535_v35 }
0x1210   :  { %v1219_v22 = vpop.f32.mrb[12].mxu0 }
0x1211   :  { %1338 = vmatmul.mubr.msk.f32.vlgmr.msra.gmra.mrb[14].mxu1 %vm274_vm3, %v1219_v22  ;;  %v1374_v23 = vpop.f32.mrb[13].mxu0 }
0x12e4   :  { %v1292_v24 = vpop.f32.mrb[14].mxu1 }
0x12e5   :  { %v1293_v25 = vadd.f32 %v1292_v24, %v1552_v45  ;;  %v1294_v28 = vpop.f32.mrb[15].mxu1 }
0x12e6   :  { %v1295_v27 = vadd.f32 %v1294_v28, %v1556_v46 }
0x12e8   :  { %v1299_v34 = vcombine.low %v1293_v25, %v1295_v27 }
0x12ea   :  { %1339 = vst.sshfl [vmem:[#allocation5] sm:$0x33 pattern:$0x76325410] %v1299_v34 }
0x12eb   :  { %1445 = shalt.err (!%p1442_p12)
}
0x12ec   :  { %s1446_s8 = scalar_lea.hbm %s1642_s4, 64 }
0x12ed   :  { %p1447_p13 = scmp.ne.s32.totalorder %s1642_s4, %s1446_s8  ;;  %p1450_p0 = scmp.lt.u32.totalorder %s1446_s8, %s1642_s4 }
0x12ef   :  { %p1452_p1 = pnand %p1450_p0, %p1447_p13 }
0x12f1   :  { %1455 = shalt.err (!%p1452_p1)
}
0x12f2   :  { %1318 = dma.vmem_to_hbm [thread:$0]  %s1316_s3, 64, %s1642_s4, [#allocation4]  }
0x12f3   :  { %1458 = dma.done.wait [#allocation4], 64  }
0x12f4   :  { %1459 = vsyncadd [#allocation4], 4294967232 }
0x12f5   :  { %1322 = vsyncpa [#allocation3], 1 }
0x12f6   :  { %1323 = vsyncpa [#allocation4], 1 }

</bundles_post_ra>
